<compile_context>
chip_gen: v6e
topology: v6e:2x2x1
jax: 0.10.0
libtpu: 0.0.40
codegen_flags: <defaults>
</compile_context>

<pallas_src>
import functools

import jax
import jax.numpy as jnp
from jax.experimental import pallas as pl
from jax.experimental.pallas import tpu as pltpu

_BN_EPS = 1e-5
_LANE = 128
_ROW_TILE = 256                    # max rows per tile (FC row tiling & query tiling)
_VMEM_LIMIT = 64 * 1024 * 1024     # fits v7x's 64 MiB physical VMEM


def _round_up(x, m):
    return ((x + m - 1) // m) * m


# ----------------------------------------------------------------------------
# Kernel 1: row-tiled Linear(+bias) that also emits per-tile BN partial stats.
# ----------------------------------------------------------------------------
def _linear_stats_kernel(n_valid, tm, x_ref, w_ref, b_ref,
                         h_ref, psum_ref, psumsq_ref):
    # x_ref: [1, TM, Cin], w_ref: [Cin, Cpad], b_ref: [1, Cpad]
    h = jnp.dot(x_ref[0], w_ref[...], preferred_element_type=jnp.float32)
    h = h + b_ref[...]
    h_ref[0] = h

    if n_valid % tm != 0:
        # Mask zero-padded rows out of the batch statistics.
        t = pl.program_id(1)
        row = jax.lax.broadcasted_iota(jnp.int32, (tm, 1), 0)
        hm = h * ((t * tm + row) < n_valid).astype(jnp.float32)
    else:
        hm = h

    cpad = h.shape[1]
    ps = jnp.sum(hm, axis=0, keepdims=True)         # [1, Cpad]
    pss = jnp.sum(hm * hm, axis=0, keepdims=True)   # [1, Cpad]
    # Stats blocks are (1, 8, Cpad) to stay (8,128)-aligned; every sublane
    # carries the tile sum, so the wrapper divides the grand total by 8.
    psum_ref[0] = jnp.broadcast_to(ps, (8, cpad))
    psumsq_ref[0] = jnp.broadcast_to(pss, (8, cpad))


def linear_with_batch_stats(x, w_pad, b_pad):
    """x: [B, N, Cin] -> (h [B, N_pad, Cpad] pre-BN, mean [Cpad], var [Cpad])."""
    B, N, Cin = x.shape
    Cpad = w_pad.shape[1]
    tm = min(_ROW_TILE, _round_up(N, 8))
    n_pad = _round_up(N, tm)
    if n_pad != N:
        x = jnp.pad(x, ((0, 0), (0, n_pad - N), (0, 0)))
    n_tiles = n_pad // tm

    kernel = functools.partial(_linear_stats_kernel, N, tm)
    h, psum, psumsq = pl.pallas_call(
        kernel,
        out_shape=(
            jax.ShapeDtypeStruct((B, n_pad, Cpad), jnp.float32),
            jax.ShapeDtypeStruct((B, n_tiles * 8, Cpad), jnp.float32),
            jax.ShapeDtypeStruct((B, n_tiles * 8, Cpad), jnp.float32),
        ),
        grid=(B, n_tiles),
        in_specs=[
            pl.BlockSpec((1, tm, Cin), lambda b, t: (b, t, 0)),
            pl.BlockSpec((Cin, Cpad), lambda b, t: (0, 0)),
            pl.BlockSpec((1, Cpad), lambda b, t: (0, 0)),
        ],
        out_specs=(
            pl.BlockSpec((1, tm, Cpad), lambda b, t: (b, t, 0)),
            pl.BlockSpec((1, 8, Cpad), lambda b, t: (b, t, 0)),
            pl.BlockSpec((1, 8, Cpad), lambda b, t: (b, t, 0)),
        ),
        compiler_params=pltpu.CompilerParams(
            dimension_semantics=("parallel", "parallel"),
            vmem_limit_bytes=_VMEM_LIMIT),
    )(x, w_pad, b_pad)

    m = B * N
    mean = jnp.sum(psum, axis=(0, 1)) / (8.0 * m)
    meansq = jnp.sum(psumsq, axis=(0, 1)) / (8.0 * m)
    var = jnp.maximum(meansq - mean * mean, 0.0)     # biased variance (BN train)
    return h, mean, var


# ----------------------------------------------------------------------------
# Kernel 2: fused BN-apply + ReLU (both streams), 3-NN inverse-distance
# interpolation of the source stream onto the query points, residual add.
# ----------------------------------------------------------------------------
def _interp_bn_add_kernel(ns_valid, xyz_q_ref, xyz_s_ref, hs_ref, hq_ref,
                          as_ref, cs_ref, aq_ref, cq_ref, o_ref):
    q = xyz_q_ref[0]                                   # [TQ, 3]
    s = xyz_s_ref[0]                                   # [Ns_pad, 3]

    # Squared pairwise distances, clamped at 0 (the |q|^2+|s|^2-2q.s form can
    # go slightly negative for near-coincident points).
    d = (jnp.sum(q * q, axis=-1, keepdims=True)
         + jnp.sum(s * s, axis=-1)[None, :]
         - 2.0 * jnp.dot(q, s.T, preferred_element_type=jnp.float32))
    d = jnp.maximum(d, 0.0)                            # [TQ, Ns_pad]

    ns_pad = d.shape[1]
    col = jax.lax.broadcasted_iota(jnp.int32, d.shape, 1)
    if ns_valid < ns_pad:                              # never select padded sources
        d = jnp.where(col < ns_valid, d, jnp.inf)

    # 3 nearest neighbours: build the sparse inverse-distance weight matrix
    # incrementally in one buffer, overwriting d between picks.
    # TODO(synk): for very large Ns a chunked streaming top-3 over Ns would
    # bound VMEM to O(TQ*TS); the dense [TQ,Ns] form is kept for Ns <~ 2K.
    wmat = None
    norm = None
    for k in range(3):
        dmin = jnp.min(d, axis=-1, keepdims=True)                  # [TQ, 1]
        first = jnp.min(jnp.where(d <= dmin, col, ns_pad),
                        axis=-1, keepdims=True)                    # lowest-index tie-break
        sel = col == first                                         # [TQ, Ns_pad]
        r = pl.reciprocal(dmin + 1e-8, approx=True)                # EUP slot, ~free
        norm = r if k == 0 else norm + r
        contrib = jnp.where(sel, r, 0.0)
        wmat = contrib if k == 0 else wmat + contrib
        if k < 2:
            d = jnp.where(sel, jnp.inf, d)
    wmat = wmat * pl.reciprocal(norm, approx=True)     # normalized 3-NN weights

    # Fused BatchNorm (train-mode scale/shift) + ReLU for both feature streams.
    fs = jnp.maximum(hs_ref[0] * as_ref[...] + cs_ref[...], 0.0)   # feats1 @ sources
    fq = jnp.maximum(hq_ref[0] * aq_ref[...] + cq_ref[...], 0.0)   # feats2 residual

    interp = jnp.dot(wmat, fs, preferred_element_type=jnp.float32)
    o_ref[0] = (interp + fq).astype(o_ref.dtype)


def interp_bn_add(xyz_q, xyz_s, h_s, a_s, c_s, h_q, a_q, c_q, ns_valid):
    B, nq_pad, _ = xyz_q.shape
    ns_pad = xyz_s.shape[1]
    Cpad = h_s.shape[-1]
    tq = min(_ROW_TILE, nq_pad)       # nq_pad is a multiple of tq by construction
    n_qt = nq_pad // tq

    kernel = functools.partial(_interp_bn_add_kernel, ns_valid)
    return pl.pallas_call(
        kernel,
        out_shape=jax.ShapeDtypeStruct((B, nq_pad, Cpad), jnp.float32),
        grid=(B, n_qt),
        in_specs=[
            pl.BlockSpec((1, tq, 3), lambda b, qi: (b, qi, 0)),        # xyz_q tile
            pl.BlockSpec((1, ns_pad, 3), lambda b, qi: (b, 0, 0)),     # xyz_s (resident per batch)
            pl.BlockSpec((1, ns_pad, Cpad), lambda b, qi: (b, 0, 0)),  # h_s   (resident per batch)
            pl.BlockSpec((1, tq, Cpad), lambda b, qi: (b, qi, 0)),     # h_q tile
            pl.BlockSpec((1, Cpad), lambda b, qi: (0, 0)),             # a_s
            pl.BlockSpec((1, Cpad), lambda b, qi: (0, 0)),             # c_s
            pl.BlockSpec((1, Cpad), lambda b, qi: (0, 0)),             # a_q
            pl.BlockSpec((1, Cpad), lambda b, qi: (0, 0)),             # c_q
        ],
        out_specs=pl.BlockSpec((1, tq, Cpad), lambda b, qi: (b, qi, 0)),
        compiler_params=pltpu.CompilerParams(
            dimension_semantics=("parallel", "parallel"),
            vmem_limit_bytes=_VMEM_LIMIT),
    )(xyz_q, xyz_s, h_s, h_q, a_s, c_s, a_q, c_q)


# ----------------------------------------------------------------------------
# TransitionUp forward
# ----------------------------------------------------------------------------
def init_params(key, dim1, dim2, dim_out):
    ks = jax.random.split(key, 8)
    sc1 = 1.0 / jnp.sqrt(dim1)
    sc2 = 1.0 / jnp.sqrt(dim2)
    return {
        # Linear weights stored as [in, out] (transposed vs torch's [out, in]).
        "w1": jax.random.uniform(ks[0], (dim1, dim_out), jnp.float32, -sc1, sc1),
        "b1": jax.random.uniform(ks[1], (dim_out,), jnp.float32, -sc1, sc1),
        "g1": 1.0 + 0.1 * jax.random.normal(ks[2], (dim_out,), jnp.float32),
        "be1": 0.1 * jax.random.normal(ks[3], (dim_out,), jnp.float32),
        "w2": jax.random.uniform(ks[4], (dim2, dim_out), jnp.float32, -sc2, sc2),
        "b2": jax.random.uniform(ks[5], (dim_out,), jnp.float32, -sc2, sc2),
        "g2": 1.0 + 0.1 * jax.random.normal(ks[6], (dim_out,), jnp.float32),
        "be2": 0.1 * jax.random.normal(ks[7], (dim_out,), jnp.float32),
    }


def transition_up(params, xyz1, points1, xyz2, points2):
    dim_out = params["w1"].shape[1]
    c_pad = _round_up(dim_out, _LANE)
    B, N1, _ = xyz1.shape
    _, N2, _ = xyz2.shape
    # TODO(synk): PointNetFeaturePropagation's S==1 repeat branch (and S<3) is
    # not implemented; requires N1 >= 3 here.
    assert N1 >= 3

    def pad_c(v):                      # pad per-channel vectors to lane-dense 128
        return jnp.pad(v, (0, c_pad - dim_out))

    w1 = jnp.pad(params["w1"], ((0, 0), (0, c_pad - dim_out)))
    w2 = jnp.pad(params["w2"], ((0, 0), (0, c_pad - dim_out)))

    # Pass 1: tiled Linear + per-tile BN statistics (two-pass BatchNorm).
    h1, mean1, var1 = linear_with_batch_stats(
        points1, w1, pad_c(params["b1"]).reshape(1, c_pad))
    h2, mean2, var2 = linear_with_batch_stats(
        points2, w2, pad_c(params["b2"]).reshape(1, c_pad))

    # Fold BN (training-mode batch stats) + affine into one scale/shift per stream.
    a1 = pad_c(params["g1"]) * jax.lax.rsqrt(var1 + _BN_EPS)
    c1 = pad_c(params["be1"]) - mean1 * a1
    a2 = pad_c(params["g2"]) * jax.lax.rsqrt(var2 + _BN_EPS)
    c2 = pad_c(params["be2"]) - mean2 * a2

    # Pad coordinates to the same row tiling the FC kernels produced.
    n1_pad, n2_pad = h1.shape[1], h2.shape[1]
    xyz1_p = jnp.pad(xyz1, ((0, 0), (0, n1_pad - N1), (0, 0)))
    xyz2_p = jnp.pad(xyz2, ((0, 0), (0, n2_pad - N2), (0, 0)))

    # Pass 2: fused BN-apply + ReLU, 3-NN interpolation of feats1 onto xyz2,
    # residual add of feats2  (== self.fp(xyz2^T, xyz1^T, None, feats1^T)^T + feats2).
    out = interp_bn_add(xyz2_p, xyz1_p,
                        h1, a1.reshape(1, c_pad), c1.reshape(1, c_pad),
                        h2, a2.reshape(1, c_pad), c2.reshape(1, c_pad), N1)
    return out[:, :N2, :dim_out]


if __name__ == "__main__":
    B, N1, N2 = 2, 8, 16        # N1 coarse points (points1/xyz1), N2 fine (points2/xyz2)
    dim1, dim2, dim_out = 32, 16, 24

    key = jax.random.PRNGKey(0)
    kp, k1, k2, k3, k4 = jax.random.split(key, 5)
    params = init_params(kp, dim1, dim2, dim_out)

    xyz1 = jax.random.normal(k1, (B, N1, 3), jnp.float32)
    points1 = jax.random.normal(k2, (B, N1, dim1), jnp.float32)
    xyz2 = jax.random.normal(k3, (B, N2, 3), jnp.float32)
    points2 = jax.random.normal(k4, (B, N2, dim2), jnp.float32)

    out = jax.jit(transition_up)(params, xyz1, points1, xyz2, points2)
    out = jax.block_until_ready(out)
    assert out.shape == (B, N2, dim_out), out.shape
    assert bool(jnp.all(jnp.isfinite(out)))
    print("KERNEL_OK")
</pallas_src>

<mosaic_0001>
module attributes {stable_mosaic.version = 11 : i64} {
  func.func @_linear_stats_kernel(%arg0: i32, %arg1: i32, %arg2: memref<1x8x32xf32, #tpu.memory_space<vmem>>, %arg3: memref<32x128xf32, #tpu.memory_space<vmem>>, %arg4: memref<1x128xf32, #tpu.memory_space<vmem>>, %arg5: memref<1x8x128xf32, #tpu.memory_space<vmem>>, %arg6: memref<1x8x128xf32, #tpu.memory_space<vmem>>, %arg7: memref<1x8x128xf32, #tpu.memory_space<vmem>>) attributes {dimension_semantics = [#tpu.dimension_semantics<parallel>, #tpu.dimension_semantics<parallel>], iteration_bounds = array<i64: 2, 1>, scalar_prefetch = 0 : i64, scratch_operands = 0 : i64, tpu.core_type = #tpu.core_type<tc>, window_params = [{transform_indices = @transform_0, window_bounds = array<i64: 1, 8, 32>}, {pipeline_mode = #tpu.pipeline_mode<synchronous>, transform_indices = @transform_1, window_bounds = array<i64: 32, 128>}, {pipeline_mode = #tpu.pipeline_mode<synchronous>, transform_indices = @transform_2, window_bounds = array<i64: 1, 128>}, {transform_indices = @transform_3, window_bounds = array<i64: 1, 8, 128>}, {transform_indices = @transform_4, window_bounds = array<i64: 1, 8, 128>}, {transform_indices = @transform_5, window_bounds = array<i64: 1, 8, 128>}]} {
    %c0 = arith.constant 0 : index
    %c0_0 = arith.constant 0 : index
    %c0_1 = arith.constant 0 : index
    %0 = vector.load %arg2[%c0, %c0_0, %c0_1] : memref<1x8x32xf32, #tpu.memory_space<vmem>>, vector<1x8x32xf32>
    %1 = vector.shape_cast %0 : vector<1x8x32xf32> to vector<8x32xf32>
    %c0_2 = arith.constant 0 : index
    %c0_3 = arith.constant 0 : index
    %2 = vector.load %arg3[%c0_2, %c0_3] : memref<32x128xf32, #tpu.memory_space<vmem>>, vector<32x128xf32>
    %cst = arith.constant dense<0.000000e+00> : vector<8x128xf32>
    %3 = tpu.matmul %1, %2, %cst {dimension_numbers = #tpu.dot_dimension_numbers<[1], [0], [0], [1], [0, 0, 1, 1], [], []>} : vector<8x32xf32>, vector<32x128xf32>, vector<8x128xf32> -> vector<8x128xf32>
    %c0_4 = arith.constant 0 : index
    %c0_5 = arith.constant 0 : index
    %4 = vector.load %arg4[%c0_4, %c0_5] : memref<1x128xf32, #tpu.memory_space<vmem>>, vector<1x128xf32>
    %5 = vector.broadcast %4 : vector<1x128xf32> to vector<8x128xf32>
    %6 = arith.addf %3, %5 : vector<8x128xf32>
    %c0_6 = arith.constant 0 : index
    %c0_7 = arith.constant 0 : index
    %c0_8 = arith.constant 0 : index
    %7 = vector.load %arg5[%c0_6, %c0_7, %c0_8] : memref<1x8x128xf32, #tpu.memory_space<vmem>>, vector<1x8x128xf32>
    %8 = vector.shape_cast %7 : vector<1x8x128xf32> to vector<8x128xf32>
    %9 = vector.shape_cast %6 : vector<8x128xf32> to vector<1x8x128xf32>
    tpu.vector_store %arg5[%c0_6, %c0_7, %c0_8], %9 {strides = array<i32>} : memref<1x8x128xf32, #tpu.memory_space<vmem>>, vector<1x8x128xf32>,
    %cst_9 = arith.constant dense<0.000000e+00> : vector<128xf32>
    %10 = vector.multi_reduction <add>, %6, %cst_9 [0] : vector<8x128xf32> to vector<128xf32>
    %11 = vector.shape_cast %10 : vector<128xf32> to vector<1x128xf32>
    %12 = arith.mulf %6, %6 : vector<8x128xf32>
    %cst_10 = arith.constant dense<0.000000e+00> : vector<128xf32>
    %13 = vector.multi_reduction <add>, %12, %cst_10 [0] : vector<8x128xf32> to vector<128xf32>
    %14 = vector.shape_cast %13 : vector<128xf32> to vector<1x128xf32>
    %15 = vector.shape_cast %11 : vector<1x128xf32> to vector<1x128xf32>
    %16 = vector.broadcast %15 : vector<1x128xf32> to vector<8x128xf32>
    %c0_11 = arith.constant 0 : index
    %c0_12 = arith.constant 0 : index
    %c0_13 = arith.constant 0 : index
    %17 = vector.load %arg6[%c0_11, %c0_12, %c0_13] : memref<1x8x128xf32, #tpu.memory_space<vmem>>, vector<1x8x128xf32>
    %18 = vector.shape_cast %17 : vector<1x8x128xf32> to vector<8x128xf32>
    %19 = vector.shape_cast %16 : vector<8x128xf32> to vector<1x8x128xf32>
    tpu.vector_store %arg6[%c0_11, %c0_12, %c0_13], %19 {strides = array<i32>} : memref<1x8x128xf32, #tpu.memory_space<vmem>>, vector<1x8x128xf32>,
    %20 = vector.shape_cast %14 : vector<1x128xf32> to vector<1x128xf32>
    %21 = vector.broadcast %20 : vector<1x128xf32> to vector<8x128xf32>
    %c0_14 = arith.constant 0 : index
    %c0_15 = arith.constant 0 : index
    %c0_16 = arith.constant 0 : index
    %22 = vector.load %arg7[%c0_14, %c0_15, %c0_16] : memref<1x8x128xf32, #tpu.memory_space<vmem>>, vector<1x8x128xf32>
    %23 = vector.shape_cast %22 : vector<1x8x128xf32> to vector<8x128xf32>
    %24 = vector.shape_cast %21 : vector<8x128xf32> to vector<1x8x128xf32>
    tpu.vector_store %arg7[%c0_14, %c0_15, %c0_16], %24 {strides = array<i32>} : memref<1x8x128xf32, #tpu.memory_space<vmem>>, vector<1x8x128xf32>,
    return
  }
  func.func @transform_0(%arg0: i32, %arg1: i32) -> (i32, i32, i32) {
    %c0_i32 = arith.constant 0 : i32
    %c0_i32_0 = arith.constant 0 : i32
    return %arg0, %arg1, %c0_i32 : i32, i32, i32
  }
  func.func @transform_1(%arg0: i32, %arg1: i32) -> (i32, i32) {
    %c0_i32 = arith.constant 0 : i32
    %c0_i32_0 = arith.constant 0 : i32
    %c0_i32_1 = arith.constant 0 : i32
    return %c0_i32, %c0_i32_0 : i32, i32
  }
  func.func @transform_2(%arg0: i32, %arg1: i32) -> (i32, i32) {
    %c0_i32 = arith.constant 0 : i32
    %c0_i32_0 = arith.constant 0 : i32
    %c0_i32_1 = arith.constant 0 : i32
    return %c0_i32, %c0_i32_0 : i32, i32
  }
  func.func @transform_3(%arg0: i32, %arg1: i32) -> (i32, i32, i32) {
    %c0_i32 = arith.constant 0 : i32
    %c0_i32_0 = arith.constant 0 : i32
    return %arg0, %arg1, %c0_i32 : i32, i32, i32
  }
  func.func @transform_4(%arg0: i32, %arg1: i32) -> (i32, i32, i32) {
    %c0_i32 = arith.constant 0 : i32
    %c0_i32_0 = arith.constant 0 : i32
    return %arg0, %arg1, %c0_i32 : i32, i32, i32
  }
  func.func @transform_5(%arg0: i32, %arg1: i32) -> (i32, i32, i32) {
    %c0_i32 = arith.constant 0 : i32
    %c0_i32_0 = arith.constant 0 : i32
    return %arg0, %arg1, %c0_i32 : i32, i32, i32
  }
}

module attributes {stable_mosaic.version = 11 : i64} {
  func.func @_linear_stats_kernel(%arg0: i32, %arg1: i32, %arg2: memref<1x16x16xf32, #tpu.memory_space<vmem>>, %arg3: memref<16x128xf32, #tpu.memory_space<vmem>>, %arg4: memref<1x128xf32, #tpu.memory_space<vmem>>, %arg5: memref<1x16x128xf32, #tpu.memory_space<vmem>>, %arg6: memref<1x8x128xf32, #tpu.memory_space<vmem>>, %arg7: memref<1x8x128xf32, #tpu.memory_space<vmem>>) attributes {dimension_semantics = [#tpu.dimension_semantics<parallel>, #tpu.dimension_semantics<parallel>], iteration_bounds = array<i64: 2, 1>, scalar_prefetch = 0 : i64, scratch_operands = 0 : i64, tpu.core_type = #tpu.core_type<tc>, window_params = [{transform_indices = @transform_0, window_bounds = array<i64: 1, 16, 16>}, {pipeline_mode = #tpu.pipeline_mode<synchronous>, transform_indices = @transform_1, window_bounds = array<i64: 16, 128>}, {pipeline_mode = #tpu.pipeline_mode<synchronous>, transform_indices = @transform_2, window_bounds = array<i64: 1, 128>}, {transform_indices = @transform_3, window_bounds = array<i64: 1, 16, 128>}, {transform_indices = @transform_4, window_bounds = array<i64: 1, 8, 128>}, {transform_indices = @transform_5, window_bounds = array<i64: 1, 8, 128>}]} {
    %c0 = arith.constant 0 : index
    %c0_0 = arith.constant 0 : index
    %c0_1 = arith.constant 0 : index
    %0 = vector.load %arg2[%c0, %c0_0, %c0_1] : memref<1x16x16xf32, #tpu.memory_space<vmem>>, vector<1x16x16xf32>
    %1 = vector.shape_cast %0 : vector<1x16x16xf32> to vector<16x16xf32>
    %c0_2 = arith.constant 0 : index
    %c0_3 = arith.constant 0 : index
    %2 = vector.load %arg3[%c0_2, %c0_3] : memref<16x128xf32, #tpu.memory_space<vmem>>, vector<16x128xf32>
    %cst = arith.constant dense<0.000000e+00> : vector<16x128xf32>
    %3 = tpu.matmul %1, %2, %cst {dimension_numbers = #tpu.dot_dimension_numbers<[1], [0], [0], [1], [0, 0, 1, 1], [], []>} : vector<16x16xf32>, vector<16x128xf32>, vector<16x128xf32> -> vector<16x128xf32>
    %c0_4 = arith.constant 0 : index
    %c0_5 = arith.constant 0 : index
    %4 = vector.load %arg4[%c0_4, %c0_5] : memref<1x128xf32, #tpu.memory_space<vmem>>, vector<1x128xf32>
    %5 = vector.broadcast %4 : vector<1x128xf32> to vector<16x128xf32>
    %6 = arith.addf %3, %5 : vector<16x128xf32>
    %c0_6 = arith.constant 0 : index
    %c0_7 = arith.constant 0 : index
    %c0_8 = arith.constant 0 : index
    %7 = vector.load %arg5[%c0_6, %c0_7, %c0_8] : memref<1x16x128xf32, #tpu.memory_space<vmem>>, vector<1x16x128xf32>
    %8 = vector.shape_cast %7 : vector<1x16x128xf32> to vector<16x128xf32>
    %9 = vector.shape_cast %6 : vector<16x128xf32> to vector<1x16x128xf32>
    tpu.vector_store %arg5[%c0_6, %c0_7, %c0_8], %9 {strides = array<i32>} : memref<1x16x128xf32, #tpu.memory_space<vmem>>, vector<1x16x128xf32>,
    %cst_9 = arith.constant dense<0.000000e+00> : vector<128xf32>
    %10 = vector.multi_reduction <add>, %6, %cst_9 [0] : vector<16x128xf32> to vector<128xf32>
    %11 = vector.shape_cast %10 : vector<128xf32> to vector<1x128xf32>
    %12 = arith.mulf %6, %6 : vector<16x128xf32>
    %cst_10 = arith.constant dense<0.000000e+00> : vector<128xf32>
    %13 = vector.multi_reduction <add>, %12, %cst_10 [0] : vector<16x128xf32> to vector<128xf32>
    %14 = vector.shape_cast %13 : vector<128xf32> to vector<1x128xf32>
    %15 = vector.shape_cast %11 : vector<1x128xf32> to vector<1x128xf32>
    %16 = vector.broadcast %15 : vector<1x128xf32> to vector<8x128xf32>
    %c0_11 = arith.constant 0 : index
    %c0_12 = arith.constant 0 : index
    %c0_13 = arith.constant 0 : index
    %17 = vector.load %arg6[%c0_11, %c0_12, %c0_13] : memref<1x8x128xf32, #tpu.memory_space<vmem>>, vector<1x8x128xf32>
    %18 = vector.shape_cast %17 : vector<1x8x128xf32> to vector<8x128xf32>
    %19 = vector.shape_cast %16 : vector<8x128xf32> to vector<1x8x128xf32>
    tpu.vector_store %arg6[%c0_11, %c0_12, %c0_13], %19 {strides = array<i32>} : memref<1x8x128xf32, #tpu.memory_space<vmem>>, vector<1x8x128xf32>,
    %20 = vector.shape_cast %14 : vector<1x128xf32> to vector<1x128xf32>
    %21 = vector.broadcast %20 : vector<1x128xf32> to vector<8x128xf32>
    %c0_14 = arith.constant 0 : index
    %c0_15 = arith.constant 0 : index
    %c0_16 = arith.constant 0 : index
    %22 = vector.load %arg7[%c0_14, %c0_15, %c0_16] : memref<1x8x128xf32, #tpu.memory_space<vmem>>, vector<1x8x128xf32>
    %23 = vector.shape_cast %22 : vector<1x8x128xf32> to vector<8x128xf32>
    %24 = vector.shape_cast %21 : vector<8x128xf32> to vector<1x8x128xf32>
    tpu.vector_store %arg7[%c0_14, %c0_15, %c0_16], %24 {strides = array<i32>} : memref<1x8x128xf32, #tpu.memory_space<vmem>>, vector<1x8x128xf32>,
    return
  }
  func.func @transform_0(%arg0: i32, %arg1: i32) -> (i32, i32, i32) {
    %c0_i32 = arith.constant 0 : i32
    %c0_i32_0 = arith.constant 0 : i32
    return %arg0, %arg1, %c0_i32 : i32, i32, i32
  }
  func.func @transform_1(%arg0: i32, %arg1: i32) -> (i32, i32) {
    %c0_i32 = arith.constant 0 : i32
    %c0_i32_0 = arith.constant 0 : i32
    %c0_i32_1 = arith.constant 0 : i32
    return %c0_i32, %c0_i32_0 : i32, i32
  }
  func.func @transform_2(%arg0: i32, %arg1: i32) -> (i32, i32) {
    %c0_i32 = arith.constant 0 : i32
    %c0_i32_0 = arith.constant 0 : i32
    %c0_i32_1 = arith.constant 0 : i32
    return %c0_i32, %c0_i32_0 : i32, i32
  }
  func.func @transform_3(%arg0: i32, %arg1: i32) -> (i32, i32, i32) {
    %c0_i32 = arith.constant 0 : i32
    %c0_i32_0 = arith.constant 0 : i32
    return %arg0, %arg1, %c0_i32 : i32, i32, i32
  }
  func.func @transform_4(%arg0: i32, %arg1: i32) -> (i32, i32, i32) {
    %c0_i32 = arith.constant 0 : i32
    %c0_i32_0 = arith.constant 0 : i32
    return %arg0, %arg1, %c0_i32 : i32, i32, i32
  }
  func.func @transform_5(%arg0: i32, %arg1: i32) -> (i32, i32, i32) {
    %c0_i32 = arith.constant 0 : i32
    %c0_i32_0 = arith.constant 0 : i32
    return %arg0, %arg1, %c0_i32 : i32, i32, i32
  }
}

module attributes {stable_mosaic.version = 11 : i64} {
  func.func @_interp_bn_add_kernel(%arg0: i32, %arg1: i32, %arg2: memref<1x16x3xf32, #tpu.memory_space<vmem>>, %arg3: memref<1x8x3xf32, #tpu.memory_space<vmem>>, %arg4: memref<1x8x128xf32, #tpu.memory_space<vmem>>, %arg5: memref<1x16x128xf32, #tpu.memory_space<vmem>>, %arg6: memref<1x128xf32, #tpu.memory_space<vmem>>, %arg7: memref<1x128xf32, #tpu.memory_space<vmem>>, %arg8: memref<1x128xf32, #tpu.memory_space<vmem>>, %arg9: memref<1x128xf32, #tpu.memory_space<vmem>>, %arg10: memref<1x16x128xf32, #tpu.memory_space<vmem>>) attributes {dimension_semantics = [#tpu.dimension_semantics<parallel>, #tpu.dimension_semantics<parallel>], iteration_bounds = array<i64: 2, 1>, scalar_prefetch = 0 : i64, scratch_operands = 0 : i64, tpu.core_type = #tpu.core_type<tc>, window_params = [{transform_indices = @transform_0, window_bounds = array<i64: 1, 16, 3>}, {transform_indices = @transform_1, window_bounds = array<i64: 1, 8, 3>}, {transform_indices = @transform_2, window_bounds = array<i64: 1, 8, 128>}, {transform_indices = @transform_3, window_bounds = array<i64: 1, 16, 128>}, {pipeline_mode = #tpu.pipeline_mode<synchronous>, transform_indices = @transform_4, window_bounds = array<i64: 1, 128>}, {pipeline_mode = #tpu.pipeline_mode<synchronous>, transform_indices = @transform_5, window_bounds = array<i64: 1, 128>}, {pipeline_mode = #tpu.pipeline_mode<synchronous>, transform_indices = @transform_6, window_bounds = array<i64: 1, 128>}, {pipeline_mode = #tpu.pipeline_mode<synchronous>, transform_indices = @transform_7, window_bounds = array<i64: 1, 128>}, {transform_indices = @transform_8, window_bounds = array<i64: 1, 16, 128>}]} {
    %c0 = arith.constant 0 : index
    %c0_0 = arith.constant 0 : index
    %c0_1 = arith.constant 0 : index
    %0 = vector.load %arg2[%c0, %c0_0, %c0_1] : memref<1x16x3xf32, #tpu.memory_space<vmem>>, vector<1x16x3xf32>
    %1 = vector.shape_cast %0 : vector<1x16x3xf32> to vector<16x3xf32>
    %c0_2 = arith.constant 0 : index
    %c0_3 = arith.constant 0 : index
    %c0_4 = arith.constant 0 : index
    %2 = vector.load %arg3[%c0_2, %c0_3, %c0_4] : memref<1x8x3xf32, #tpu.memory_space<vmem>>, vector<1x8x3xf32>
    %3 = vector.shape_cast %2 : vector<1x8x3xf32> to vector<8x3xf32>
    %4 = arith.mulf %1, %1 : vector<16x3xf32>
    %cst = arith.constant dense<0.000000e+00> : vector<16xf32>
    %5 = vector.multi_reduction <add>, %4, %cst [1] : vector<16x3xf32> to vector<16xf32>
    %6 = vector.shape_cast %5 : vector<16xf32> to vector<16x1xf32>
    %7 = arith.mulf %3, %3 : vector<8x3xf32>
    %cst_5 = arith.constant dense<0.000000e+00> : vector<8xf32>
    %8 = vector.multi_reduction <add>, %7, %cst_5 [1] : vector<8x3xf32> to vector<8xf32>
    %9 = vector.shape_cast %8 : vector<8xf32> to vector<1x8xf32>
    %10 = vector.broadcast %6 : vector<16x1xf32> to vector<16x8xf32>
    %11 = vector.broadcast %9 : vector<1x8xf32> to vector<16x8xf32>
    %12 = arith.addf %10, %11 : vector<16x8xf32>
    %13 = tpu.transpose %3, [1, 0] : vector<8x3xf32> -> vector<3x8xf32>
    %cst_6 = arith.constant dense<0.000000e+00> : vector<16x8xf32>
    %14 = tpu.matmul %1, %13, %cst_6 {dimension_numbers = #tpu.dot_dimension_numbers<[1], [0], [0], [1], [0, 0, 1, 1], [], []>} : vector<16x3xf32>, vector<3x8xf32>, vector<16x8xf32> -> vector<16x8xf32>
    %cst_7 = arith.constant 2.000000e+00 : f32
    %15 = vector.broadcast %cst_7 : f32 to vector<16x8xf32>
    %16 = arith.mulf %15, %14 : vector<16x8xf32>
    %17 = arith.subf %12, %16 : vector<16x8xf32>
    %cst_8 = arith.constant 0.000000e+00 : f32
    %18 = vector.broadcast %cst_8 : f32 to vector<16x8xf32>
    %19 = arith.maximumf %17, %18 : vector<16x8xf32>
    %20 = tpu.iota {dimensions = array<i32: 1>} : vector<16x8xi32>
    %cst_9 = arith.constant dense<0x7F800000> : vector<16xf32>
    %21 = vector.multi_reduction <minimumf>, %19, %cst_9 [1] : vector<16x8xf32> to vector<16xf32>
    %22 = vector.shape_cast %21 : vector<16xf32> to vector<16x1xf32>
    %23 = vector.broadcast %22 : vector<16x1xf32> to vector<16x8xf32>
    %24 = arith.cmpf ole, %19, %23 : vector<16x8xf32>
    %c8_i32 = arith.constant 8 : i32
    %25 = vector.broadcast %c8_i32 : i32 to vector<16x8xi32>
    %26 = arith.select %24, %20, %25 : vector<16x8xi1>, vector<16x8xi32>
    %cst_10 = arith.constant dense<2147483647> : vector<16xi32>
    %27 = vector.multi_reduction <minsi>, %26, %cst_10 [1] : vector<16x8xi32> to vector<16xi32>
    %28 = vector.shape_cast %27 : vector<16xi32> to vector<16x1xi32>
    %29 = vector.broadcast %28 : vector<16x1xi32> to vector<16x8xi32>
    %30 = arith.cmpi eq, %20, %29 : vector<16x8xi32>
    %cst_11 = arith.constant 9.99999993E-9 : f32
    %31 = vector.broadcast %cst_11 : f32 to vector<16x1xf32>
    %32 = arith.addf %22, %31 : vector<16x1xf32>
    %33 = tpu.reciprocal %32 {approx = true} : vector<16x1xf32> -> vector<16x1xf32>
    %cst_12 = arith.constant 0.000000e+00 : f32
    %34 = vector.shape_cast %33 : vector<16x1xf32> to vector<16x1xf32>
    %35 = vector.broadcast %34 : vector<16x1xf32> to vector<16x8xf32>
    %36 = vector.broadcast %cst_12 : f32 to vector<16x8xf32>
    %37 = arith.select %30, %35, %36 : vector<16x8xi1>, vector<16x8xf32>
    %cst_13 = arith.constant 0x7F800000 : f32
    %38 = vector.broadcast %cst_13 : f32 to vector<16x8xf32>
    %39 = arith.select %30, %38, %19 : vector<16x8xi1>, vector<16x8xf32>
    %cst_14 = arith.constant dense<0x7F800000> : vector<16xf32>
    %40 = vector.multi_reduction <minimumf>, %39, %cst_14 [1] : vector<16x8xf32> to vector<16xf32>
    %41 = vector.shape_cast %40 : vector<16xf32> to vector<16x1xf32>
    %42 = vector.broadcast %41 : vector<16x1xf32> to vector<16x8xf32>
    %43 = arith.cmpf ole, %39, %42 : vector<16x8xf32>
    %c8_i32_15 = arith.constant 8 : i32
    %44 = vector.broadcast %c8_i32_15 : i32 to vector<16x8xi32>
    %45 = arith.select %43, %20, %44 : vector<16x8xi1>, vector<16x8xi32>
    %cst_16 = arith.constant dense<2147483647> : vector<16xi32>
    %46 = vector.multi_reduction <minsi>, %45, %cst_16 [1] : vector<16x8xi32> to vector<16xi32>
    %47 = vector.shape_cast %46 : vector<16xi32> to vector<16x1xi32>
    %48 = vector.broadcast %47 : vector<16x1xi32> to vector<16x8xi32>
    %49 = arith.cmpi eq, %20, %48 : vector<16x8xi32>
    %cst_17 = arith.constant 9.99999993E-9 : f32
    %50 = vector.broadcast %cst_17 : f32 to vector<16x1xf32>
    %51 = arith.addf %41, %50 : vector<16x1xf32>
    %52 = tpu.reciprocal %51 {approx = true} : vector<16x1xf32> -> vector<16x1xf32>
    %53 = arith.addf %33, %52 : vector<16x1xf32>
    %cst_18 = arith.constant 0.000000e+00 : f32
    %54 = vector.shape_cast %52 : vector<16x1xf32> to vector<16x1xf32>
    %55 = vector.broadcast %54 : vector<16x1xf32> to vector<16x8xf32>
    %56 = vector.broadcast %cst_18 : f32 to vector<16x8xf32>
    %57 = arith.select %49, %55, %56 : vector<16x8xi1>, vector<16x8xf32>
    %58 = arith.addf %37, %57 : vector<16x8xf32>
    %cst_19 = arith.constant 0x7F800000 : f32
    %59 = vector.broadcast %cst_19 : f32 to vector<16x8xf32>
    %60 = arith.select %49, %59, %39 : vector<16x8xi1>, vector<16x8xf32>
    %cst_20 = arith.constant dense<0x7F800000> : vector<16xf32>
    %61 = vector.multi_reduction <minimumf>, %60, %cst_20 [1] : vector<16x8xf32> to vector<16xf32>
    %62 = vector.shape_cast %61 : vector<16xf32> to vector<16x1xf32>
    %63 = vector.broadcast %62 : vector<16x1xf32> to vector<16x8xf32>
    %64 = arith.cmpf ole, %60, %63 : vector<16x8xf32>
    %c8_i32_21 = arith.constant 8 : i32
    %65 = vector.broadcast %c8_i32_21 : i32 to vector<16x8xi32>
    %66 = arith.select %64, %20, %65 : vector<16x8xi1>, vector<16x8xi32>
    %cst_22 = arith.constant dense<2147483647> : vector<16xi32>
    %67 = vector.multi_reduction <minsi>, %66, %cst_22 [1] : vector<16x8xi32> to vector<16xi32>
    %68 = vector.shape_cast %67 : vector<16xi32> to vector<16x1xi32>
    %69 = vector.broadcast %68 : vector<16x1xi32> to vector<16x8xi32>
    %70 = arith.cmpi eq, %20, %69 : vector<16x8xi32>
    %cst_23 = arith.constant 9.99999993E-9 : f32
    %71 = vector.broadcast %cst_23 : f32 to vector<16x1xf32>
    %72 = arith.addf %62, %71 : vector<16x1xf32>
    %73 = tpu.reciprocal %72 {approx = true} : vector<16x1xf32> -> vector<16x1xf32>
    %74 = arith.addf %53, %73 : vector<16x1xf32>
    %cst_24 = arith.constant 0.000000e+00 : f32
    %75 = vector.shape_cast %73 : vector<16x1xf32> to vector<16x1xf32>
    %76 = vector.broadcast %75 : vector<16x1xf32> to vector<16x8xf32>
    %77 = vector.broadcast %cst_24 : f32 to vector<16x8xf32>
    %78 = arith.select %70, %76, %77 : vector<16x8xi1>, vector<16x8xf32>
    %79 = arith.addf %58, %78 : vector<16x8xf32>
    %80 = tpu.reciprocal %74 {approx = true} : vector<16x1xf32> -> vector<16x1xf32>
    %81 = vector.broadcast %80 : vector<16x1xf32> to vector<16x8xf32>
    %82 = arith.mulf %79, %81 : vector<16x8xf32>
    %c0_25 = arith.constant 0 : index
    %c0_26 = arith.constant 0 : index
    %c0_27 = arith.constant 0 : index
    %83 = vector.load %arg4[%c0_25, %c0_26, %c0_27] : memref<1x8x128xf32, #tpu.memory_space<vmem>>, vector<1x8x128xf32>
    %84 = vector.shape_cast %83 : vector<1x8x128xf32> to vector<8x128xf32>
    %c0_28 = arith.constant 0 : index
    %c0_29 = arith.constant 0 : index
    %85 = vector.load %arg6[%c0_28, %c0_29] : memref<1x128xf32, #tpu.memory_space<vmem>>, vector<1x128xf32>
    %86 = vector.broadcast %85 : vector<1x128xf32> to vector<8x128xf32>
    %87 = arith.mulf %84, %86 : vector<8x128xf32>
    %c0_30 = arith.constant 0 : index
    %c0_31 = arith.constant 0 : index
    %88 = vector.load %arg7[%c0_30, %c0_31] : memref<1x128xf32, #tpu.memory_space<vmem>>, vector<1x128xf32>
    %89 = vector.broadcast %88 : vector<1x128xf32> to vector<8x128xf32>
    %90 = arith.addf %87, %89 : vector<8x128xf32>
    %cst_32 = arith.constant 0.000000e+00 : f32
    %91 = vector.broadcast %cst_32 : f32 to vector<8x128xf32>
    %92 = arith.maximumf %90, %91 : vector<8x128xf32>
    %c0_33 = arith.constant 0 : index
    %c0_34 = arith.constant 0 : index
    %c0_35 = arith.constant 0 : index
    %93 = vector.load %arg5[%c0_33, %c0_34, %c0_35] : memref<1x16x128xf32, #tpu.memory_space<vmem>>, vector<1x16x128xf32>
    %94 = vector.shape_cast %93 : vector<1x16x128xf32> to vector<16x128xf32>
    %c0_36 = arith.constant 0 : index
    %c0_37 = arith.constant 0 : index
    %95 = vector.load %arg8[%c0_36, %c0_37] : memref<1x128xf32, #tpu.memory_space<vmem>>, vector<1x128xf32>
    %96 = vector.broadcast %95 : vector<1x128xf32> to vector<16x128xf32>
    %97 = arith.mulf %94, %96 : vector<16x128xf32>
    %c0_38 = arith.constant 0 : index
    %c0_39 = arith.constant 0 : index
    %98 = vector.load %arg9[%c0_38, %c0_39] : memref<1x128xf32, #tpu.memory_space<vmem>>, vector<1x128xf32>
    %99 = vector.broadcast %98 : vector<1x128xf32> to vector<16x128xf32>
    %100 = arith.addf %97, %99 : vector<16x128xf32>
    %cst_40 = arith.constant 0.000000e+00 : f32
    %101 = vector.broadcast %cst_40 : f32 to vector<16x128xf32>
    %102 = arith.maximumf %100, %101 : vector<16x128xf32>
    %cst_41 = arith.constant dense<0.000000e+00> : vector<16x128xf32>
    %103 = tpu.matmul %82, %92, %cst_41 {dimension_numbers = #tpu.dot_dimension_numbers<[1], [0], [0], [1], [0, 0, 1, 1], [], []>} : vector<16x8xf32>, vector<8x128xf32>, vector<16x128xf32> -> vector<16x128xf32>
    %104 = arith.addf %103, %102 : vector<16x128xf32>
    %c0_42 = arith.constant 0 : index
    %c0_43 = arith.constant 0 : index
    %c0_44 = arith.constant 0 : index
    %105 = vector.load %arg10[%c0_42, %c0_43, %c0_44] : memref<1x16x128xf32, #tpu.memory_space<vmem>>, vector<1x16x128xf32>
    %106 = vector.shape_cast %105 : vector<1x16x128xf32> to vector<16x128xf32>
    %107 = vector.shape_cast %104 : vector<16x128xf32> to vector<1x16x128xf32>
    tpu.vector_store %arg10[%c0_42, %c0_43, %c0_44], %107 {strides = array<i32>} : memref<1x16x128xf32, #tpu.memory_space<vmem>>, vector<1x16x128xf32>,
    return
  }
  func.func @transform_0(%arg0: i32, %arg1: i32) -> (i32, i32, i32) {
    %c0_i32 = arith.constant 0 : i32
    %c0_i32_0 = arith.constant 0 : i32
    return %arg0, %arg1, %c0_i32 : i32, i32, i32
  }
  func.func @transform_1(%arg0: i32, %arg1: i32) -> (i32, i32, i32) {
    %c0_i32 = arith.constant 0 : i32
    %c0_i32_0 = arith.constant 0 : i32
    %c0_i32_1 = arith.constant 0 : i32
    return %arg0, %c0_i32, %c0_i32_0 : i32, i32, i32
  }
  func.func @transform_2(%arg0: i32, %arg1: i32) -> (i32, i32, i32) {
    %c0_i32 = arith.constant 0 : i32
    %c0_i32_0 = arith.constant 0 : i32
    %c0_i32_1 = arith.constant 0 : i32
    return %arg0, %c0_i32, %c0_i32_0 : i32, i32, i32
  }
  func.func @transform_3(%arg0: i32, %arg1: i32) -> (i32, i32, i32) {
    %c0_i32 = arith.constant 0 : i32
    %c0_i32_0 = arith.constant 0 : i32
    return %arg0, %arg1, %c0_i32 : i32, i32, i32
  }
  func.func @transform_4(%arg0: i32, %arg1: i32) -> (i32, i32) {
    %c0_i32 = arith.constant 0 : i32
    %c0_i32_0 = arith.constant 0 : i32
    %c0_i32_1 = arith.constant 0 : i32
    return %c0_i32, %c0_i32_0 : i32, i32
  }
  func.func @transform_5(%arg0: i32, %arg1: i32) -> (i32, i32) {
    %c0_i32 = arith.constant 0 : i32
    %c0_i32_0 = arith.constant 0 : i32
    %c0_i32_1 = arith.constant 0 : i32
    return %c0_i32, %c0_i32_0 : i32, i32
  }
  func.func @transform_6(%arg0: i32, %arg1: i32) -> (i32, i32) {
    %c0_i32 = arith.constant 0 : i32
    %c0_i32_0 = arith.constant 0 : i32
    %c0_i32_1 = arith.constant 0 : i32
    return %c0_i32, %c0_i32_0 : i32, i32
  }
  func.func @transform_7(%arg0: i32, %arg1: i32) -> (i32, i32) {
    %c0_i32 = arith.constant 0 : i32
    %c0_i32_0 = arith.constant 0 : i32
    %c0_i32_1 = arith.constant 0 : i32
    return %c0_i32, %c0_i32_0 : i32, i32
  }
  func.func @transform_8(%arg0: i32, %arg1: i32) -> (i32, i32, i32) {
    %c0_i32 = arith.constant 0 : i32
    %c0_i32_0 = arith.constant 0 : i32
    return %arg0, %arg1, %c0_i32 : i32, i32, i32
  }
}

</mosaic_0001>

<bundles_post_ra>
// kernel: transition_up.3
= control target key start
LH: loop header
LB: loop body
LE: loop exit
PB: predicated region body
PF: predicated region fallthrough
CT: control target
= control target key end

     0   :  { %s657_s18 = smov 0   ;;  %s659_s19 = smov 0   ;;  %s717_s0 = inlined_call_operand.vmem [shape: f32[2,8,32], index: 0, kind: input, shape index: {}]   ;;  %s718_s1 = inlined_call_operand.vmem [shape: f32[32,128], index: 1, kind: input, shape index: {}]   ;;  %s719_s2 = inlined_call_operand.vmem [shape: f32[1,128], index: 2, kind: input, shape index: {}]   ;;  %s720_s3 = inlined_call_operand.vmem [shape: f32[2,8,128], index: 3, kind: output, shape index: {0}]   ;;  %s721_s4 = inlined_call_operand.vmem [shape: f32[2,8,128], index: 4, kind: output, shape index: {1}]   ;;  %s722_s5 = inlined_call_operand.vmem [shape: f32[2,8,128], index: 5, kind: output, shape index: {2}]  }
   0x1   :  { %s661_s20 = smov 0  }
   0x2 LB: > { %s28_s21 = sadd.s32 1, %s619_s19  ;;  %p550_p0 = scmp.ge.s32.totalorder %s623_s20, 1  ;;  %s623_s20 = sphi %s661_s20, %s16_s20   ;;  %s619_s19 = sphi %s659_s19, %s724_s19   ;;  %s615_s18 = sphi %s657_s18, %s723_s18  }
   0x3   : > { %p30_p1 = scmp.ge.s32.totalorder %s28_s21, 2  ;;  %p214_p2 = scmp.lt.s32.totalorder %s623_s20, 3 }
   0x5   : > { %s726_s21 = smov (%p30_p1, %s28_s21), 0  ;;  %p215_p3 = pnand %p550_p0, %p214_p2 }
   0x6   : > { %p260_p4 = scmp.lt.s32.totalorder (!%p215_p3), %s615_s18, 1 }
   0x7   : > { %218 = sbr.rel (%p215_p3) target bundleno = 231 (0xe7), region = 32 }
   0xc   : > { %v292_v0 = vld [vmem:[%s718_s1 + $0x18] sm:$0xff]  ;;  %v625_v1 = vmov 0.0   ;;  %v291_v2 = vld [vmem:[%s718_s1 + $0x10] sm:$0xff]  ;;  %vm626_vm0 = vmmov 0   ;;  %s728_s18 = smov (!%p260_p4, %s615_s18), 1  ;;  %v290_v3 = vld [vmem:[%s718_s1 + $0x8] sm:$0xff] }
   0xd   : > { %564 = vmatprep.subr.mxu0 %v625_v1  ;;  %572 = vmatprep.mubr.msk.f32.mxu0 %vm626_vm0, %v625_v1  ;;  %s684_s28 = sshll.u32 %s728_s18, 3  ;;  %v289_v4 = vld [vmem:[%s718_s1] sm:$0xff]  ;;  %vm300_vm1 = vcmask 261120  }
   0xe   : > { %565 = vmatpush3.msra.mxu0 %v292_v0  ;;  %s266_s8 = scalar_lea.vmem %s717_s0, %s684_s28  ;;  %v555_v6 = vld [vmem:[%s719_s2] ss:$0 sm:$0xff]  ;;  %s273_s13 = scalar_lea.vmem %s720_s3, %s684_s28 }
   0xf   : > { %566 = vmatprep.subr.mxu0 %v625_v1  ;;  %v288_v5 = vld [vmem:[%s266_s8] sm:$0xff]  ;;  %s280_s16 = scalar_lea.vmem %s721_s4, %s684_s28  ;;  %s287_s22 = scalar_lea.vmem %s722_s5, %s684_s28 }
  0x10   : > { %567 = vmatpush3.msra.mxu0 %v291_v2 }
  0x11   : > { %568 = vmatprep.subr.mxu0 %v625_v1 }
  0x12   : > { %569 = vmatpush3.msra.mxu0 %v290_v3 }
  0x13   : > { %570 = vmatprep.subr.mxu0 %v625_v1 }
  0x14   : > { %571 = vmatpush3.msra.mxu0 %v289_v4 }
  0x15   : > { %573 = vmatmul.mubr.msk.f32.vlgmr.msra.gmra.mxu0 %vm300_vm1, %v288_v5 }
  0xd5   : > { %v370_v7 = vpop.f32.mrf.mxu0 }
  0xd6   : > { %v371_v8 = vadd.f32 %v555_v6, %v370_v7 }
  0xd7   : > { %v574_v9 = vpop.f32.mrf.mxu0 }
  0xd8   : > { %374 = vst [vmem:[%s273_s13] sm:$0xff] %v371_v8  ;;  %v375_v10 = vrot.slane %v371_v8, 4  ;;  %v381_v11 = vmul.f32 %v371_v8, %v371_v8 }
  0xda   : > { %v376_v12 = vadd.f32 %v375_v10, %v371_v8  ;;  %v382_v13 = vrot.slane %v381_v11, 4 }
  0xdc   : > { %v377_v14 = vrot.slane %v376_v12, 2  ;;  %v383_v15 = vadd.f32 %v382_v13, %v381_v11 }
  0xde   : > { %v378_v16 = vadd.f32 %v377_v14, %v376_v12  ;;  %v384_v17 = vrot.slane %v383_v15, 2 }
  0xe0   : > { %v379_v18 = vrot.slane %v378_v16, 1  ;;  %v385_v19 = vadd.f32 %v384_v17, %v383_v15 }
  0xe2   : > { %v380_v20 = vadd.f32 %v379_v18, %v378_v16  ;;  %v386_v21 = vrot.slane %v385_v19, 1 }
  0xe4   : > { %v387_v22 = vadd.f32 %v386_v21, %v385_v19  ;;  %388 = vst [vmem:[%s280_s16] sm:$0xff] %v380_v20 }
  0xe6   : > { %389 = vst [vmem:[%s287_s22] sm:$0xff] %v387_v22 }
  0xe7 PF: > { %s16_s20 = sadd.s32 1, %s623_s20   ;;  %s723_s18 = smov %s619_s19 }
  0xe8   : > { %p13_p5 = scmp.ge.s32.totalorder %s16_s20, 4   ;;  %s724_s19 = smov %s726_s21 }
  0xea   :  { %15 = sbr.rel (!%p13_p5) target bundleno = 2 (0x2), region = 86 }

// kernel: transition_up.4
= control target key start
LH: loop header
LB: loop body
LE: loop exit
PB: predicated region body
PF: predicated region fallthrough
CT: control target
= control target key end

     0   :  { %s690_s18 = smov 0   ;;  %s692_s19 = smov 0   ;;  %s742_s0 = inlined_call_operand.vmem [shape: f32[2,16,16], index: 0, kind: input, shape index: {}]   ;;  %s743_s1 = inlined_call_operand.vmem [shape: f32[16,128], index: 1, kind: input, shape index: {}]   ;;  %s744_s2 = inlined_call_operand.vmem [shape: f32[1,128], index: 2, kind: input, shape index: {}]   ;;  %s745_s3 = inlined_call_operand.vmem [shape: f32[2,16,128], index: 3, kind: output, shape index: {0}]   ;;  %s746_s4 = inlined_call_operand.vmem [shape: f32[2,8,128], index: 4, kind: output, shape index: {1}]   ;;  %s747_s5 = inlined_call_operand.vmem [shape: f32[2,8,128], index: 5, kind: output, shape index: {2}]  }
   0x1   :  { %s694_s20 = smov 0  }
   0x2 LB: > { %s28_s21 = sadd.s32 1, %s654_s19  ;;  %p587_p0 = scmp.ge.s32.totalorder %s658_s20, 1  ;;  %s658_s20 = sphi %s694_s20, %s16_s20   ;;  %s654_s19 = sphi %s692_s19, %s749_s19   ;;  %s650_s18 = sphi %s690_s18, %s748_s18  }
   0x3   : > { %p30_p1 = scmp.ge.s32.totalorder %s28_s21, 2  ;;  %p217_p2 = scmp.lt.s32.totalorder %s658_s20, 3 }
   0x5   : > { %s751_s21 = smov (%p30_p1, %s28_s21), 0  ;;  %p218_p3 = pnand %p587_p0, %p217_p2 }
   0x6   : > { %p268_p4 = scmp.lt.s32.totalorder (!%p218_p3), %s650_s18, 1 }
   0x7   : > { %221 = sbr.rel (%p218_p3) target bundleno = 231 (0xe7), region = 32 }
   0xc   : > { %v304_v0 = vld [vmem:[%s743_s1 + $0x8] sm:$0xff]  ;;  %v303_v1 = vld [vmem:[%s743_s1] sm:$0xff]  ;;  %s753_s18 = smov (!%p268_p4, %s650_s18), 1  ;;  %vm312_vm0 = vcmask 130048  }
   0xd   : > { %605 = vmatprep.subr.mxu0 %v304_v0  ;;  %s599_s26 = sshll.u32 %s753_s18, 4  ;;  %v594_v4 = vld [vmem:[%s744_s2] ss:$0 sm:$0xff]  ;;  %s592_s10 = sshll.u32 %s753_s18, 3 }
   0xe   : > { %606 = vmatpush3.msra.mxu0 %v304_v0  ;;  %s275_s29 = scalar_lea.vmem %s742_s0, %s599_s26  ;;  %s285_s9 = scalar_lea.vmem %s745_s3, %s599_s26 }
   0xf   : > { %607 = vmatprep.subr.mxu0 %v303_v1  ;;  %v301_v2 = vld [vmem:[%s275_s29] sm:$0xff]  ;;  %v302_v3 = vld [vmem:[%s275_s29 + $0x8] sm:$0xff]  ;;  %s293_s13 = scalar_lea.vmem %s746_s4, %s592_s10  ;;  %s300_s16 = scalar_lea.vmem %s747_s5, %s592_s10 }
  0x10   : > { %608 = vmatpush3.msra.mxu0 %v303_v1  ;;  %609 = vmatprep.mubr.msk.f32.mxu0 %vm312_vm0, %v301_v2 }
  0x11   : > { %610 = vmatmul.mubr.msk.f32.vlgmr.msra.gmra.mxu0 %vm312_vm0, %v302_v3 }
  0xd1   : > { %v611_v5 = vpop.f32.mrf.mxu0 }
  0xd2   : > { %v391_v6 = vadd.f32 %v611_v5, %v594_v4 }
  0xd3   : > { %v385_v7 = vpop.f32.mrf.mxu0 }
  0xd4   : > { %395 = vst [vmem:[%s285_s9 + $0x8] sm:$0xff] %v391_v6  ;;  %v386_v8 = vadd.f32 %v594_v4, %v385_v7  ;;  %v404_v9 = vmul.f32 %v391_v6, %v391_v6 }
  0xd6   : > { %394 = vst [vmem:[%s285_s9] sm:$0xff] %v386_v8  ;;  %v396_v10 = vadd.f32 %v391_v6, %v386_v8  ;;  %v403_v11 = vmul.f32 %v386_v8, %v386_v8 }
  0xd8   : > { %v397_v12 = vrot.slane %v396_v10, 4  ;;  %v405_v13 = vadd.f32 %v404_v9, %v403_v11 }
  0xda   : > { %v398_v14 = vadd.f32 %v397_v12, %v396_v10  ;;  %v406_v15 = vrot.slane %v405_v13, 4 }
  0xdc   : > { %v399_v16 = vrot.slane %v398_v14, 2  ;;  %v407_v17 = vadd.f32 %v406_v15, %v405_v13 }
  0xde   : > { %v400_v18 = vadd.f32 %v399_v16, %v398_v14  ;;  %v408_v19 = vrot.slane %v407_v17, 2 }
  0xe0   : > { %v401_v20 = vrot.slane %v400_v18, 1  ;;  %v409_v21 = vadd.f32 %v408_v19, %v407_v17 }
  0xe2   : > { %v402_v22 = vadd.f32 %v401_v20, %v400_v18  ;;  %v410_v23 = vrot.slane %v409_v21, 1 }
  0xe4   : > { %v411_v24 = vadd.f32 %v410_v23, %v409_v21  ;;  %412 = vst [vmem:[%s293_s13] sm:$0xff] %v402_v22 }
  0xe6   : > { %413 = vst [vmem:[%s300_s16] sm:$0xff] %v411_v24 }
  0xe7 PF: > { %s16_s20 = sadd.s32 1, %s658_s20   ;;  %s748_s18 = smov %s654_s19 }
  0xe8   : > { %p13_p5 = scmp.ge.s32.totalorder %s16_s20, 4   ;;  %s749_s19 = smov %s751_s21 }
  0xea   :  { %15 = sbr.rel (!%p13_p5) target bundleno = 2 (0x2), region = 86 }

// kernel: transition_up.5
= control target key start
LH: loop header
LB: loop body
LE: loop exit
PB: predicated region body
PF: predicated region fallthrough
CT: control target
= control target key end

     0   :  { %13 = vsyncpa [#allocation3], 0  ;;  %s1408_s0 = inlined_call_operand.vmem [shape: f32[2,16,3], index: 0, kind: input, shape index: {}]   ;;  %s1409_s1 = inlined_call_operand.vmem [shape: f32[2,8,3], index: 1, kind: input, shape index: {}]   ;;  %s1410_s2 = inlined_call_operand.vmem [shape: f32[2,8,128], index: 2, kind: input, shape index: {}]   ;;  %s1411_s3 = inlined_call_operand.vmem [shape: f32[2,16,128], index: 3, kind: input, shape index: {}]   ;;  %s1412_s4 = inlined_call_operand.vmem [shape: f32[1,128], index: 4, kind: input, shape index: {}]   ;;  %s1413_s5 = inlined_call_operand.vmem [shape: f32[1,128], index: 5, kind: input, shape index: {}]   ;;  %s1414_s6 = inlined_call_operand.vmem [shape: f32[1,128], index: 6, kind: input, shape index: {}]   ;;  %s1415_s7 = inlined_call_operand.vmem [shape: f32[1,128], index: 7, kind: input, shape index: {}]   ;;  %s1416_s8 = inlined_call_operand.hbm [shape: f32[2,16,128], index: 8, kind: output, shape index: {}]  }
   0x1   :  { %15 = vsyncpa [#allocation3 + $0x1], 0  ;;  %s1198_s27 = smov 0   ;;  %s1200_s28 = smov 0  }
   0x2   :  { %s1202_s29 = smov 0   ;;  %s1204_s30 = smov 0  }
   0x3   :  { %s1206_s9 = smov 0   ;;  %s1208_s10 = smov 0  }
   0x4 LB: > { %s954_s11 = sadd.s32 4294967295, %s1148_s10   ;;  %s955_s12 = sadd.s32 4294967294, %s1148_s10   ;;  %s1148_s10 = sphi %s1208_s10, %s21_s10   ;;  %s1144_s9 = sphi %s1206_s9, %s1423_s9   ;;  %s1140_s30 = sphi %s1204_s30, %s1422_s30   ;;  %s1136_s29 = sphi %s1202_s29, %s1421_s29   ;;  %s1132_s28 = sphi %s1200_s28, %s1420_s28   ;;  %s1128_s27 = sphi %s1198_s27, %s1419_s27  }
   0x5   : > { %s33_s13 = sadd.s32 1, %s1144_s9  ;;  %s234_s14 = sadd.s32 1, %s1136_s29 }
   0x6   : > { %p35_p0 = scmp.ge.s32.totalorder %s33_s13, 2  ;;  %p244_p1 = scmp.ne.s32.totalorder %s1136_s29, %s1132_s28 }
   0x7   : > { %p245_p2 = scmp.eq.s32.totalorder %s954_s11, 1  ;;  %p250_p3 = scmp.ne.s32.totalorder %s1132_s28, %s1128_s27 }
   0x8   : > { %s1425_s13 = smov (%p35_p0, %s33_s13), 0  ;;  %p251_p5 = scmp.eq.s32.totalorder %s955_s12, 1 }
   0x9   : > { %p1238_p4 = por %p245_p2, %p244_p1  ;;  %s229_s16 = ssub.s32 %s1144_s9, %s1425_s13 }
   0xa   : > { %p958_p6 = scmp.ge.s32.totalorder %s1148_s10, 1  ;;  %p232_p7 = scmp.eq.s32.totalorder %s229_s16, 0 }
   0xb   : > { %p1245_p8 = por %p251_p5, %p250_p3  ;;  %p321_p9 = scmp.lt.s32.totalorder %s1148_s10, 3 }
   0xc   : > { %s1251_s18 = scalar_select %p232_p7, %s1136_s29, %s234_s14  }
   0xd   : > { %p322_p10 = pnand %p958_p6, %p321_p9 }
   0xe   : > { %p377_p11 = scmp.lt.s32.totalorder (!%p322_p10), %s1140_s30, 1  ;;  %s982_s25 = sshll.u32 (!%p322_p10), %s1140_s30, 8 }
   0xf   : > { %325 = sbr.rel (%p322_p10) target bundleno = 1736 (0x6c8), region = 52 }
  0x14   : > { %s1255_s19 = scalar_select %p377_p11, %s1140_s30, 1  ;;  %vm410_vm0 = vcmask 23552   ;;  %v422_v9 = vlaneseq  ;;  %vm533_vm1 = vcmask 64512  }
  0x15   : > { %s1150_s30 = smov [#allocation2]  }
  0x16   : > { %s962_s20 = sshll.u32 %s1255_s19, 3  ;;  %s980_s21 = sshll.u32 %s1255_s19, 4  ;;  %v1276_v10 = vand.u32 127, %v422_v9  ;;  %v425_v11 = vshrl.u32 %v422_v9, 7 }
  0x17   : > { %s389_s24 = scalar_lea.vmem %s1409_s1, %s962_s20  ;;  %s384_s11 = scalar_lea.vmem %s1408_s0, %s980_s21 }
  0x18   : > { %v407_v0 = vld [vmem:[%s389_s24] sm:$0xff]  ;;  %v406_v2 = vld [vmem:[%s384_s11 + $0x8] sm:$0xff]  ;;  %v426_v12 = vsub.s32 %v1276_v10, %v425_v11  ;;  %s393_s16 = scalar_lea.vmem %s1410_s2, %s962_s20  ;;  %s1076_s22 = sshll.u32 %s1150_s30, 4  ;;  %s1077_s22 = int_to_ptr.vmem [resolvable:$false] %s1076_s22 }
  0x19   : > { %989 = vmatprep.subr.msk.mxu0 %vm410_vm0, %v407_v0  ;;  %v405_v1 = vld [vmem:[%s384_s11] sm:$0xff]  ;;  %v417_v3 = vmul.f32 %v407_v0, %v407_v0  ;;  %v409_v5 = vmul.f32 %v406_v2, %v406_v2  ;;  %s402_s11 = scalar_lea.vmem %s1411_s3, %s980_s21  ;;  %s1078_s23 = scalar_lea.vmem %s1077_s22, 512 }
  0x1a   : > { %990 = vmatpush3.xpose.msk.msra.mxu0 %vm410_vm0, %v407_v0  ;;  %v408_v4 = vmul.f32 %v405_v1, %v405_v1  ;;  %991 = vmatprep.mubr.msk.f32.mxu0 %vm410_vm0, %v405_v1 }
  0x1b   : > { %v418_v6 = vsel %vm410_vm0, %v417_v3, 0.0  ;;  %v414_v7 = vsel %vm410_vm0, %v409_v5, 0.0 }
  0x1c   : > { %419 = vadd.xlane.f32.xlu0 %v418_v6  ;;  %415 = vadd.xlane.f32.xlu1 %v414_v7  ;;  %v411_v8 = vsel %vm410_vm0, %v408_v4, 0.0 }
  0x1d   : > { %992 = vmatmul.mubr.msk.f32.vlgmr.msra.gmra.mxu0 %vm410_vm0, %v406_v2 }
  0x20   : > { %412 = vadd.xlane.f32.xlu0 %v411_v8 }
  0xa5   : > { %v420_v13 = vpop.xlane.xlu0 %419  ;;  %v416_v15 = vpop.xlane.xlu1 %415 }
  0xa6   : > { %v427_v14 = vrot.slane %v420_v13, %v426_v12 }
  0xa8   : > { %v442_v16 = vadd.f32 %v427_v14, %v416_v15 }
  0xa9   : > { %v413_v18 = vpop.xlane.xlu0 %412 }
  0xaa   : > { %v441_v22 = vadd.f32 %v427_v14, %v413_v18 }
  0xdd   : > { %v993_v17 = vpop.f32.mrf.mxu0 }
  0xde   : > { %v528_v19 = vmul.f32 2.0, %v993_v17 }
  0xdf   : > { %v518_v20 = vpop.f32.mrf.mxu0 }
  0xe0   : > { %v530_v21 = vsub.f32 %v442_v16, %v528_v19  ;;  %v527_v23 = vmul.f32 2.0, %v518_v20 }
  0xe2   : > { %v532_v24 = vmax.f32 %v530_v21, 0.0  ;;  %v529_v25 = vsub.f32 %v441_v22, %v527_v23 }
  0xe4   : > { %v531_v26 = vmax.f32 %v529_v25, 0.0  ;;  %v537_v27 = vsel %vm533_vm1, %v532_v24, inf }
  0xe5   : > { %538 = vmin.xlane.f32.xlu0 %v537_v27 }
  0xe6   : > { %v534_v28 = vsel %vm533_vm1, %v531_v26, inf }
  0xe7   : > { %535 = vmin.xlane.f32.xlu1 %v534_v28 }
 0x16e   : > { %v1281_v29 = vpop.xlane.xlu0 %538 }
 0x16f   : > { %vm541_vm2 = vcmp.le.f32.partialorder %v532_v24, %v1281_v29  ;;  %v577_v16 = vadd.f32 1e-08, %v1281_v29 }
 0x170   : > { %v543_v30 = vsel %vm541_vm2, %v1276_v10, 8  ;;  %v1285_v31 = vpop.xlane.xlu1 %535 }
 0x171   : > { %vm540_vm3 = vcmp.le.f32.partialorder %v531_v26, %v1285_v31  ;;  %v559_v32 = vsel %vm533_vm1, %v543_v30, 2147483647  ;;  %v576_v18 = vadd.f32 1e-08, %v1285_v31  ;;  %1056 = vrcp.f32 %v577_v16 }
 0x172   : > { %v542_v33 = vsel %vm540_vm3, %v1276_v10, 8  ;;  %v561_v34 = vshra.s32 %v559_v32, 16  ;;  %v560_v39 = vand.u32 65535, %v559_v32 }
 0x173   : > { %v544_v35 = vsel %vm533_vm1, %v542_v33, 2147483647 }
 0x174   : > { %v563_v36 = vcvt.s32.f32 %v561_v34  ;;  %v546_v37 = vshra.s32 %v544_v35, 16  ;;  %v545_v40 = vand.u32 65535, %v544_v35  ;;  %v562_v42 = vcvt.s32.f32 %v560_v39 }
 0x176   : > { %564 = vmin.xlane.f32.xlu0 %v563_v36  ;;  %v548_v38 = vcvt.s32.f32 %v546_v37  ;;  %v547_v45 = vcvt.s32.f32 %v545_v40 }
 0x178   : > { %549 = vmin.xlane.f32.xlu1 %v548_v38 }
 0x17e   : > { %v1057_v30 = vpop.eup %1056 }
 0x1ff   : > { %v565_v41 = vpop.xlane.xlu0 %564 }
 0x200   : > { %vm566_vm4 = vcmp.eq.f32.partialorder %v563_v36, %v565_v41  ;;  %v571_v47 = vcvt.f32.s32 %v565_v41 }
 0x201   : > { %v550_v43 = vpop.xlane.xlu1 %549  ;;  %v567_v44 = vsel %vm566_vm4, %v562_v42, inf }
 0x202   : > { %568 = vmin.xlane.f32.xlu0 %v567_v44  ;;  %vm551_vm5 = vcmp.eq.f32.partialorder %v548_v38, %v550_v43  ;;  %v556_v48 = vcvt.f32.s32 %v550_v43  ;;  %v572_v50 = vshll.u32 %v571_v47, 16 }
 0x203   : > { %v552_v46 = vsel %vm551_vm5, %v547_v45, inf }
 0x204   : > { %553 = vmin.xlane.f32.xlu1 %v552_v46  ;;  %v557_v53 = vshll.u32 %v556_v48, 16 }
 0x28b   : > { %v569_v49 = vpop.xlane.xlu0 %568 }
 0x28c   : > { %v570_v51 = vcvt.f32.s32 %v569_v49 }
 0x28d   : > { %v554_v52 = vpop.xlane.xlu1 %553 }
 0x28e   : > { %v573_v54 = vadd.s32 %v572_v50, %v570_v51  ;;  %v555_v55 = vcvt.f32.s32 %v554_v52 }
 0x290   : > { %v1291_v56 = vadd.s32 %v557_v53, %v555_v55  ;;  %vm575_vm6 = vcmp.eq.s32.totalorder %v1276_v10, %v573_v54 }
 0x291   : > { %v583_v57 = vsel %vm575_vm6, inf, %v532_v24  ;;  %v581_v33 = vsel %vm575_vm6, %v1057_v30, 0.0 }
 0x292   : > { %v587_v58 = vsel %vm533_vm1, %v583_v57, inf  ;;  %vm574_vm7 = vcmp.eq.s32.totalorder %v1276_v10, %v1291_v56 }
 0x293   : > { %588 = vmin.xlane.f32.xlu0 %v587_v58  ;;  %v582_v59 = vsel %vm574_vm7, inf, %v531_v26 }
 0x294   : > { %v584_v60 = vsel %vm533_vm1, %v582_v59, inf }
 0x295   : > { %585 = vmin.xlane.f32.xlu1 %v584_v60 }
 0x31c   : > { %v589_v61 = vpop.xlane.xlu0 %588 }
 0x31d   : > { %vm591_vm8 = vcmp.le.f32.partialorder %v583_v57, %v589_v61  ;;  %v627_v17 = vadd.f32 1e-08, %v589_v61 }
 0x31e   : > { %v593_v62 = vsel %vm591_vm8, %v1276_v10, 8  ;;  %v586_v63 = vpop.xlane.xlu1 %585 }
 0x31f   : > { %vm590_vm9 = vcmp.le.f32.partialorder %v582_v59, %v586_v63  ;;  %v609_v0 = vsel %vm533_vm1, %v593_v62, 2147483647  ;;  %v626_v19 = vadd.f32 1e-08, %v586_v63  ;;  %1058 = vrcp.f32 %v627_v17  ;;  %v694_v62 = vld [vmem:[%s393_s16] sm:$0xff]  ;;  %s373_s16 = sand.u32 1, %s1132_s28  }
 0x320   : > { %v592_v1 = vsel %vm590_vm9, %v1276_v10, 8  ;;  %v611_v2 = vshra.s32 %v609_v0, 16  ;;  %v610_v7 = vand.u32 65535, %v609_v0  ;;  %1060 = vrcp.f32 %v576_v18  ;;  %v969_v63 = vld [vmem:[%s1412_s4] ss:$0 sm:$0xff]  ;;  %s959_s24 = sshll.u32 %s373_s16, 4 }
 0x321   : > { %v594_v3 = vsel %vm533_vm1, %v592_v1, 2147483647  ;;  %1062 = vrcp.f32 %v626_v19  ;;  %v702_v0 = vmul.f32 %v969_v63, %v694_v62  ;;  %v970_v1 = vld [vmem:[%s1413_s5] ss:$0 sm:$0xff]  ;;  %s375_s19 = scalar_lea.vmem [#allocation2], %s959_s24  ;;  %s1363_s12 = scalar_lea.sflag [#allocation3], %s373_s16 }
 0x322   : > { %v613_v4 = vcvt.s32.f32 %v611_v2  ;;  %v596_v5 = vshra.s32 %v594_v3, 16  ;;  %v595_v8 = vand.u32 65535, %v594_v3  ;;  %v612_v11 = vcvt.s32.f32 %v610_v7  ;;  %s833_s21 = sshll.u32 %s375_s19, 4  ;;  %s1356_s21 = int_to_ptr.vmem [resolvable:$true] %s833_s21 }
 0x323   : > { %v710_v2 = vadd.f32 %v970_v1, %v702_v0  ;;  %s1072_s14 = scalar_lea.vmem %s1356_s21, 256  ;;  %p1079_p1 = scmp.lt.s32.totalorder %s1356_s21, %s1077_s22 }
 0x324   : > { %614 = vmin.xlane.f32.xlu0 %v613_v4  ;;  %v598_v6 = vcvt.s32.f32 %v596_v5  ;;  %v597_v14 = vcvt.s32.f32 %v595_v8  ;;  %p1073_p12 = scmp.ne.s32.totalorder %s1356_s21, %s1072_s14  ;;  %p1080_p2 = scmp.lt.s32.totalorder %s1078_s23, %s1072_s14 }
 0x325   : > { %v711_v3 = vmax.f32 %v710_v2, 0.0 }
 0x326   : > { %599 = vmin.xlane.f32.xlu1 %v598_v6  ;;  %p1074_p13 = pnand %p1073_p12, %p1238_p4  ;;  %p1081_p3 = por %p1080_p2, %p1079_p1 }
 0x327   : > { %994 = vmatprep.subr.mxu1 %v711_v3 }
 0x328   : > { %995 = vmatpush3.msra.mxu1 %v711_v3  ;;  %p1075_p0 = pneg %p1074_p13 }
 0x32a   : > { %p1082_p5 = pnand %p1081_p3, %p1075_p0 }
 0x32c   : > { %v1059_v32 = vpop.eup %1058 }
 0x32d   : > { %v1061_v31 = vpop.eup %1060 }
 0x32e   : > { %v1063_v36 = vpop.eup %1062  ;;  %v580_v39 = vsel %vm574_vm7, %v1061_v31, 0.0 }
 0x32f   : > { %v630_v8 = vadd.f32 %v1063_v36, %v1061_v31  ;;  %v712_v31 = vld [vmem:[%s402_s11] sm:$0xff] }
 0x3ad   : > { %v615_v9 = vpop.xlane.xlu0 %614 }
 0x3ae   : > { %vm616_vm10 = vcmp.eq.f32.partialorder %v613_v4, %v615_v9  ;;  %v621_v20 = vcvt.f32.s32 %v615_v9  ;;  %v631_v9 = vadd.f32 %v1059_v32, %v1057_v30 }
 0x3af   : > { %v600_v12 = vpop.xlane.xlu1 %599  ;;  %v617_v13 = vsel %vm616_vm10, %v612_v11, inf }
 0x3b0   : > { %618 = vmin.xlane.f32.xlu0 %v617_v13  ;;  %vm601_vm11 = vcmp.eq.f32.partialorder %v598_v6, %v600_v12  ;;  %v606_v21 = vcvt.f32.s32 %v600_v12  ;;  %v622_v23 = vshll.u32 %v621_v20, 16 }
 0x3b1   : > { %v602_v15 = vsel %vm601_vm11, %v597_v14, inf }
 0x3b2   : > { %603 = vmin.xlane.f32.xlu1 %v602_v15  ;;  %v607_v26 = vshll.u32 %v606_v21, 16 }
 0x439   : > { %v619_v22 = vpop.xlane.xlu0 %618 }
 0x43a   : > { %v620_v24 = vcvt.f32.s32 %v619_v22 }
 0x43b   : > { %v604_v25 = vpop.xlane.xlu1 %603 }
 0x43c   : > { %v623_v27 = vadd.s32 %v622_v23, %v620_v24  ;;  %v605_v28 = vcvt.f32.s32 %v604_v25 }
 0x43e   : > { %v608_v29 = vadd.s32 %v607_v26, %v605_v28  ;;  %vm625_vm12 = vcmp.eq.s32.totalorder %v1276_v10, %v623_v27 }
 0x43f   : > { %v637_v34 = vsel %vm625_vm12, inf, %v583_v57  ;;  %v633_v35 = vsel %vm625_vm12, %v1059_v32, 0.0 }
 0x440   : > { %v641_v37 = vsel %vm533_vm1, %v637_v34, inf  ;;  %v1313_v38 = vadd.f32 %v633_v35, %v581_v33  ;;  %vm624_vm13 = vcmp.eq.s32.totalorder %v1276_v10, %v608_v29  ;;  %v971_v29 = vld [vmem:[%s1414_s6] ss:$0 sm:$0xff] }
 0x441   : > { %642 = vmin.xlane.f32.xlu0 %v641_v37  ;;  %v636_v40 = vsel %vm624_vm13, inf, %v582_v59  ;;  %v632_v41 = vsel %vm624_vm13, %v1063_v36, 0.0  ;;  %v721_v35 = vmul.f32 %v971_v29, %v712_v31 }
 0x442   : > { %v638_v42 = vsel %vm533_vm1, %v636_v40, inf  ;;  %v1320_v43 = vadd.f32 %v632_v41, %v580_v39 }
 0x443   : > { %639 = vmin.xlane.f32.xlu1 %v638_v42 }
 0x4ca   : > { %v643_v44 = vpop.xlane.xlu0 %642 }
 0x4cb   : > { %vm645_vm14 = vcmp.le.f32.partialorder %v637_v34, %v643_v44  ;;  %v681_v5 = vadd.f32 1e-08, %v643_v44  ;;  %v972_v34 = vld [vmem:[%s1415_s7] ss:$0 sm:$0xff] }
 0x4cc   : > { %v647_v45 = vsel %vm645_vm14, %v1276_v10, 8  ;;  %v640_v46 = vpop.xlane.xlu1 %639  ;;  %v730_v37 = vadd.f32 %v972_v34, %v721_v35 }
 0x4cd   : > { %vm644_vm15 = vcmp.le.f32.partialorder %v636_v40, %v640_v46  ;;  %v663_v47 = vsel %vm533_vm1, %v647_v45, 2147483647  ;;  %v680_v4 = vadd.f32 1e-08, %v640_v46 }
 0x4ce   : > { %v646_v48 = vsel %vm644_vm15, %v1276_v10, 8  ;;  %v665_v49 = vshra.s32 %v663_v47, 16  ;;  %v664_v54 = vand.u32 65535, %v663_v47  ;;  %v732_v39 = vmax.f32 %v730_v37, 0.0 }
 0x4cf   : > { %v648_v50 = vsel %vm533_vm1, %v646_v48, 2147483647  ;;  %1064 = vrcp.f32 %v680_v4 }
 0x4d0   : > { %v667_v51 = vcvt.s32.f32 %v665_v49  ;;  %v650_v52 = vshra.s32 %v648_v50, 16  ;;  %v649_v55 = vand.u32 65535, %v648_v50  ;;  %v666_v57 = vcvt.s32.f32 %v664_v54 }
 0x4d1   : > { %1066 = vrcp.f32 %v681_v5 }
 0x4d2   : > { %668 = vmin.xlane.f32.xlu0 %v667_v51  ;;  %v652_v53 = vcvt.s32.f32 %v650_v52  ;;  %v651_v60 = vcvt.s32.f32 %v649_v55 }
 0x4d4   : > { %653 = vmin.xlane.f32.xlu1 %v652_v53 }
 0x4dc   : > { %v1065_v6 = vpop.eup %1064 }
 0x4dd   : > { %v684_v11 = vadd.f32 %v1065_v6, %v630_v8 }
 0x4de   : > { %v1067_v7 = vpop.eup %1066 }
 0x4df   : > { %v685_v12 = vadd.f32 %v1067_v7, %v631_v9  ;;  %1068 = vrcp.f32 %v684_v11 }
 0x4e1   : > { %1070 = vrcp.f32 %v685_v12 }
 0x4ec   : > { %v1069_v27 = vpop.eup %1068 }
 0x4ee   : > { %v1071_v28 = vpop.eup %1070 }
 0x55b   : > { %v669_v56 = vpop.xlane.xlu0 %668 }
 0x55c   : > { %vm670_vm0 = vcmp.eq.f32.partialorder %v667_v51, %v669_v56  ;;  %v675_v13 = vcvt.f32.s32 %v669_v56 }
 0x55d   : > { %v654_v58 = vpop.xlane.xlu1 %653  ;;  %v671_v59 = vsel %vm670_vm0, %v666_v57, inf }
 0x55e   : > { %672 = vmin.xlane.f32.xlu0 %v671_v59  ;;  %vm655_vm2 = vcmp.eq.f32.partialorder %v652_v53, %v654_v58  ;;  %v660_v14 = vcvt.f32.s32 %v654_v58  ;;  %v676_v16 = vshll.u32 %v675_v13, 16 }
 0x55f   : > { %v656_v61 = vsel %vm655_vm2, %v651_v60, inf }
 0x560   : > { %657 = vmin.xlane.f32.xlu1 %v656_v61  ;;  %v661_v19 = vshll.u32 %v660_v14, 16 }
 0x5e7   : > { %v673_v15 = vpop.xlane.xlu0 %672 }
 0x5e8   : > { %v674_v17 = vcvt.f32.s32 %v673_v15 }
 0x5e9   : > { %v658_v18 = vpop.xlane.xlu1 %657 }
 0x5ea   : > { %v677_v20 = vadd.s32 %v676_v16, %v674_v17  ;;  %v659_v21 = vcvt.f32.s32 %v658_v18 }
 0x5ec   : > { %vm679_vm3 = vcmp.eq.s32.totalorder %v1276_v10, %v677_v20  ;;  %v662_v22 = vadd.s32 %v661_v19, %v659_v21 }
 0x5ed   : > { %v687_v23 = vsel %vm679_vm3, %v1067_v7, 0.0 }
 0x5ee   : > { %vm678_vm4 = vcmp.eq.s32.totalorder %v1276_v10, %v662_v22  ;;  %v689_v24 = vadd.f32 %v687_v23, %v1313_v38  ;;  %v713_v10 = vld [vmem:[%s402_s11 + $0x8] sm:$0xff]  ;;  %s1361_s11 = scalar_lea.hbm %s1416_s8, %s982_s25 }
 0x5ef   : > { %v686_v25 = vsel %vm678_vm4, %v1065_v6, 0.0  ;;  %v722_v33 = vmul.f32 %v971_v29, %v713_v10 }
 0x5f0   : > { %v688_v26 = vadd.f32 %v686_v25, %v1320_v43  ;;  %v693_v32 = vmul.f32 %v1071_v28, %v689_v24 }
 0x5f1   : > { %v731_v36 = vadd.f32 %v972_v34, %v722_v33 }
 0x5f2   : > { %v692_v30 = vmul.f32 %v1069_v27, %v688_v26 }
 0x5f3   : > { %v733_v38 = vmax.f32 %v731_v36, 0.0 }
 0x5f4   : > { %996 = vmatprep.mubr.msk.f32.mxu1 %vm533_vm1, %v692_v30 }
 0x5f5   : > { %997 = vmatmul.mubr.msk.f32.vlgmr.msra.gmra.mxu1 %vm533_vm1, %v693_v32 }
 0x6b5   : > { %v998_v40 = vpop.f32.mrf.mxu1 }
 0x6b6   : > { %v812_v41 = vadd.f32 %v998_v40, %v733_v38 }
 0x6b7   : > { %v806_v42 = vpop.f32.mrf.mxu1 }
 0x6b8   : > { %816 = vst [vmem:[%s375_s19 + $0x8] sm:$0xff] %v812_v41  ;;  %v807_v43 = vadd.f32 %v806_v42, %v732_v39 }
 0x6ba   : > { %815 = vst [vmem:[%s375_s19] sm:$0xff] %v807_v43 }
 0x6bb   : > { %1085 = shalt.err (!%p1082_p5)
}
 0x6bc   : > { %s1086_s16 = scalar_lea.hbm %s1361_s11, 256  ;;  %s1090_s25 = scalar_lea.hbm %s1416_s8, 512 }
 0x6bd   : > { %p1087_p6 = scmp.ne.s32.totalorder %s1361_s11, %s1086_s16  ;;  %p1091_p10 = scmp.lt.s32.totalorder %s1361_s11, %s1416_s8 }
 0x6be   : > { %p1092_p11 = scmp.lt.s32.totalorder %s1090_s25, %s1086_s16 }
 0x6bf   : > { %p1088_p7 = pnand %p1087_p6, %p1238_p4 }
 0x6c0   : > { %p1093_p12 = por %p1092_p11, %p1091_p10 }
 0x6c1   : > { %p1089_p9 = pneg %p1088_p7 }
 0x6c3   : > { %p1094_p13 = pnand %p1093_p12, %p1089_p9 }
 0x6c5   : > { %1097 = shalt.err (!%p1094_p13)
}
 0x6c6   : > { %s1151_s14 = smov 128   ;;  %s1152_s30 = smov 8  }
 0x6c7   : > { %999 = dma.vmem_to_hbm [thread:$0]  (%p1238_p4), %s1356_s21, 256, %s1361_s11, %s1363_s12, %s1151_s14, %s1151_s14, %s1152_s30  }
 0x6c8 PF: > { %p1005_p0 = scmp.ge.s32.totalorder %s1148_s10, 2  ;;  %s848_s22 = sand.u32 1, %s1128_s27  }
 0x6c9   : > { %s849_s23 = scalar_lea.sflag [#allocation3], %s848_s22 }
 0x6ca   : > { %p1002_p1 = pnand %p1005_p0, %p1245_p8 }
 0x6cc   : > { %p1003_p2 = pneg %p1002_p1 }
 0x6ce   : > { %1123 = dma.done.wait (%p1003_p2), %s849_s23, 256  }
 0x6cf   : > { %1125 = vsyncadd (%p1003_p2), %s849_s23, 4294967040  ;;  %s21_s10 = sadd.s32 1, %s1148_s10   ;;  %s1419_s27 = smov %s1132_s28 }
 0x6d0   : > { %p18_p3 = scmp.ge.s32.totalorder %s21_s10, 4   ;;  %s1420_s28 = smov %s1136_s29 }
 0x6d1   : > { %s1421_s29 = smov %s1251_s18  ;;  %s1422_s30 = smov %s1144_s9 }
 0x6d2   : > { %s1423_s9 = smov %s1425_s13  ;;  %20 = sbr.rel (!%p18_p3) target bundleno = 4 (0x4), region = 96 }
 0x6d7   :  { %854 = vsyncpa [#allocation3], 1 }
 0x6d8   :  { %856 = vsyncpa [#allocation3 + $0x1], 1 }

</bundles_post_ra>
